<compile_context>
chip_gen: v7x
topology: tpu7x:2x2x1
jax: 0.10.0
libtpu: 0.0.40
codegen_flags: <defaults>
</compile_context>

<pallas_src>
import jax
import jax.numpy as jnp
from jax.experimental import pallas as pl
from jax.experimental.pallas import tpu as pltpu


def _round_up(v, m):
    return (v + m - 1) // m * m


def _pick_tile(dim, target, align):
    """Largest multiple of `align` that divides `dim` and is <= target.

    `dim` is already a multiple of `align`, so this always succeeds (worst
    case returns `align`) and never introduces padded/dead work.
    """
    target = max(align, min(target, dim))
    t = (target // align) * align
    while t >= align:
        if dim % t == 0:
            return t
        t -= align
    return align


def _vmem_budget():
    """(physical VMEM bytes, per-kernel tile budget) for this chip."""
    try:
        cap = int(pltpu.get_tpu_info().vmem_capacity_bytes)
    except Exception:  # interpret mode / older runtimes
        cap = 64 << 20
    # Use at most half of physical VMEM for our buffers (double-buffered
    # inputs/outputs + scratch), capped at 48 MiB; leaves compiler headroom
    # and works on v7x (64 MiB) as well as v5e/v6e (128 MiB).
    return cap, min(cap // 2, 48 << 20)


# ----------------------------- kernels --------------------------------------


def _make_resident_kernel(has_bias):
    """Fast path: full weight resident, 1-D grid over M, no K loop."""
    if has_bias:
        def kernel(x_ref, w_ref, b_ref, o_ref):
            acc = jnp.dot(x_ref[...], w_ref[...],
                          preferred_element_type=jnp.float32)
            acc = acc + b_ref[...].astype(jnp.float32)
            o_ref[...] = acc.astype(o_ref.dtype)
    else:
        def kernel(x_ref, w_ref, o_ref):
            o_ref[...] = jnp.dot(
                x_ref[...], w_ref[...],
                preferred_element_type=jnp.float32).astype(o_ref.dtype)
    return kernel


def _acc_out_body(x_ref, w_ref, b_ref, o_ref):
    kk = pl.program_id(2)

    @pl.when(kk == 0)
    def _():
        o_ref[...] = jnp.zeros_like(o_ref)

    o_ref[...] += jnp.dot(x_ref[...], w_ref[...],
                          preferred_element_type=jnp.float32)

    if b_ref is not None:
        @pl.when(kk == pl.num_programs(2) - 1)
        def _():
            o_ref[...] += b_ref[...].astype(jnp.float32)


def _make_acc_out_kernel(has_bias):
    """f32 output: accumulate directly into the resident output block."""
    if has_bias:
        def kernel(x_ref, w_ref, b_ref, o_ref):
            _acc_out_body(x_ref, w_ref, b_ref, o_ref)
    else:
        def kernel(x_ref, w_ref, o_ref):
            _acc_out_body(x_ref, w_ref, None, o_ref)
    return kernel


def _scratch_body(x_ref, w_ref, b_ref, o_ref, acc_ref):
    kk = pl.program_id(2)

    @pl.when(kk == 0)
    def _():
        acc_ref[...] = jnp.zeros_like(acc_ref)

    acc_ref[...] += jnp.dot(x_ref[...], w_ref[...],
                            preferred_element_type=jnp.float32)

    @pl.when(kk == pl.num_programs(2) - 1)
    def _():
        out = acc_ref[...]
        if b_ref is not None:
            out = out + b_ref[...].astype(jnp.float32)
        o_ref[...] = out.astype(o_ref.dtype)


def _make_scratch_kernel(has_bias):
    """Non-f32 output: f32 VMEM accumulator, cast on finalize."""
    if has_bias:
        def kernel(x_ref, w_ref, b_ref, o_ref, acc_ref):
            _scratch_body(x_ref, w_ref, b_ref, o_ref, acc_ref)
    else:
        def kernel(x_ref, w_ref, o_ref, acc_ref):
            _scratch_body(x_ref, w_ref, None, o_ref, acc_ref)
    return kernel


# ----------------------------- wrapper ---------------------------------------


def column_parallel_linear(x, weights, bias=None, *, compute_dtype=None):
    """Forward pass of ColumnParallelLinear: x @ weights (+ bias)."""
    *lead, k = x.shape
    kw, n_part = weights.shape
    assert k == kw, f"feature mismatch: {k} vs {kw}"

    if compute_dtype is not None:
        # Optional bf16 MXU path (f32 accumulation is preserved in-kernel).
        x = x.astype(compute_dtype)
        weights = weights.astype(compute_dtype)

    out_dtype = jnp.result_type(x.dtype, weights.dtype)
    has_bias = bias is not None

    m = 1
    for d in lead:
        m *= d
    x2d = x.reshape(m, k)

    xb = x2d.dtype.itemsize
    wb = weights.dtype.itemsize
    ob = jnp.dtype(out_dtype).itemsize

    # Alignment: 16 rows when packed (bf16-ish) dtypes are involved, else 8.
    align_m = 16 if min(xb, ob) < 4 else 8
    mp = _round_up(max(m, 1), align_m)
    kp = _round_up(k, 128)          # lane-dense K (zero pad is math-neutral)
    np_ = _round_up(n_part, 128)    # lane-dense output (no masked stores)

    # Pad only when needed.  TODO(synk): for a real model, pre-pad/cache the
    # weight once at load time instead of per call.
    if (mp, kp) != (m, k):
        x2d = jnp.pad(x2d, ((0, mp - m), (0, kp - k)))
    w_p = weights
    if (kp, np_) != (k, n_part):
        w_p = jnp.pad(weights, ((0, kp - k), (0, np_ - n_part)))
    b2d = None
    if has_bias:
        b2d = bias.reshape(1, n_part)
        if np_ != n_part:
            b2d = jnp.pad(b2d, ((0, 0), (0, np_ - n_part)))

    cap, budget = _vmem_budget()
    out_shape = jax.ShapeDtypeStruct((mp, np_), out_dtype)

    # -------------------- small-weight fast path --------------------
    w_bytes_vmem = kp * np_ * wb
    if w_bytes_vmem <= (4 << 20):
        tm_t = 512
        while True:
            tm = _pick_tile(mp, tm_t, align_m)
            fp = (2 * tm * kp * xb + 2 * w_bytes_vmem
                  + 2 * tm * np_ * ob + np_ * 4)
            if fp <= budget or tm_t <= align_m:
                break
            tm_t //= 2

        if fp <= budget:
            in_specs = [pl.BlockSpec((tm, kp), lambda i: (i, 0)),
                        pl.BlockSpec((kp, np_), lambda i: (0, 0))]
            operands = [x2d, w_p]
            if has_bias:
                in_specs.append(pl.BlockSpec((1, np_), lambda i: (0, 0)))
                operands.append(b2d)

            cost = pl.CostEstimate(
                flops=2 * mp * kp * np_,
                transcendentals=0,
                bytes_accessed=(x2d.size * xb + w_p.size * wb + mp * np_ * ob
                                + (b2d.size * b2d.dtype.itemsize
                                   if has_bias else 0)))

            out = pl.pallas_call(
                _make_resident_kernel(has_bias),
                out_shape=out_shape,
                grid_spec=pltpu.PrefetchScalarGridSpec(
                    num_scalar_prefetch=0,
                    grid=(mp // tm,),
                    in_specs=in_specs,
                    out_specs=pl.BlockSpec((tm, np_), lambda i: (i, 0)),
                ),
                compiler_params=pltpu.CompilerParams(
                    dimension_semantics=("parallel",),
                    vmem_limit_bytes=int(min(cap, max(fp + (8 << 20),
                                                      32 << 20)))),
                cost_estimate=cost,
            )(*operands)
            out = out[:m, :n_part]
            return out.reshape(*lead, n_part)

    # -------------------- general 3-D tiled path --------------------
    acc_into_out = (out_dtype == jnp.float32)
    use_scratch = not acc_into_out

    # Large tile targets; shrink only until the double-buffered footprint fits
    # this generation's VMEM budget (divisor-constrained: no padded dead work).
    tm_t, tn_t, tk_t = 512, 1024, 1024
    while True:
        tm = _pick_tile(mp, tm_t, align_m)
        tn = _pick_tile(np_, tn_t, 128)
        tk = _pick_tile(kp, tk_t, 128)
        fp = (2 * (tm * tk * xb + tk * tn * wb) + 2 * tm * tn * ob
              + (tm * tn * 4 if use_scratch else 0) + tn * 4)
        if fp <= budget:
            break
        if tk_t >= max(tm_t, tn_t) and tk_t > 128:
            tk_t //= 2
        elif tn_t >= tm_t and tn_t > 128:
            tn_t //= 2
        elif tm_t > 128:
            tm_t //= 2
        else:
            break  # already at floor tiles; tiny footprint, accept

    # v7x has 2 TensorCores: guarantee >= 2 blocks on the parallel axes
    # (prefer splitting N over M).
    if (mp // tm) * (np_ // tn) < 2:
        if np_ >= 2 * 128:
            tn = _pick_tile(np_, np_ // 2, 128)
        elif mp >= 2 * align_m:
            tm = _pick_tile(mp, mp // 2, align_m)

    grid = (mp // tm, np_ // tn, kp // tk)

    x_spec = pl.BlockSpec((tm, tk), lambda i, j, kk: (i, kk))
    w_spec = pl.BlockSpec((tk, tn), lambda i, j, kk: (kk, j))
    o_spec = pl.BlockSpec((tm, tn), lambda i, j, kk: (i, j))
    in_specs = [x_spec, w_spec]
    operands = [x2d, w_p]
    if has_bias:
        in_specs.append(pl.BlockSpec((1, tn), lambda i, j, kk: (0, j)))
        operands.append(b2d)

    scratch = [] if acc_into_out else [pltpu.VMEM((tm, tn), jnp.float32)]
    kernel = (_make_acc_out_kernel(has_bias) if acc_into_out
              else _make_scratch_kernel(has_bias))

    cost = pl.CostEstimate(
        flops=2 * mp * kp * np_,
        transcendentals=0,
        bytes_accessed=(x2d.size * xb * (np_ // tn)        # x re-read per N tile
                        + w_p.size * wb * (mp // tm)       # w re-read per M tile
                        + mp * np_ * ob
                        + (b2d.size * b2d.dtype.itemsize * (mp // tm)
                           if has_bias else 0)))

    out = pl.pallas_call(
        kernel,
        out_shape=out_shape,
        grid_spec=pltpu.PrefetchScalarGridSpec(
            num_scalar_prefetch=0,
            grid=grid,
            in_specs=in_specs,
            out_specs=o_spec,
            scratch_shapes=scratch,
        ),
        compiler_params=pltpu.CompilerParams(
            dimension_semantics=("parallel", "parallel", "arbitrary"),
            vmem_limit_bytes=int(min(cap, max(fp + (8 << 20), 32 << 20)))),
        cost_estimate=cost,
    )(*operands)

    out = out[:m, :n_part]
    return out.reshape(*lead, n_part)


# ----------------------------- demo / check ----------------------------------

if __name__ == "__main__":
    key = jax.random.PRNGKey(0)

    # --- Case 1: module-sized example (small-weight fast path) ---
    input_features = 32
    output_features = 64
    num_partitions = 2
    bias_flag = True
    n_part = output_features // num_partitions  # 32

    kx, kw, kb, kx2, kw2, kb2 = jax.random.split(key, 6)

    weights = jax.random.uniform(kw, (input_features, n_part), dtype=jnp.float32)
    bias = jax.random.uniform(kb, (n_part,), dtype=jnp.float32) if bias_flag else None
    x = jax.random.uniform(kx, (2, 8, input_features), dtype=jnp.float32)

    out = jax.block_until_ready(column_parallel_linear(x, weights, bias))
    ref = jnp.matmul(x, weights) + (bias if bias is not None else 0.0)
    assert out.shape == (2, 8, n_part)
    assert jnp.allclose(out, ref, atol=1e-5, rtol=1e-5)

    # --- Case 2: larger K/N (exercises the tiled 3-D reduction path) ---
    k2, n2 = 2048, 1024
    w2 = jax.random.uniform(kw2, (k2, n2), dtype=jnp.float32) * 0.05
    b2 = jax.random.uniform(kb2, (n2,), dtype=jnp.float32)
    x2 = jax.random.uniform(kx2, (2, 8, k2), dtype=jnp.float32) * 0.05

    out2 = jax.block_until_ready(column_parallel_linear(x2, w2, b2))
    ref2 = jnp.matmul(x2, w2) + b2
    assert out2.shape == (2, 8, n2)
    assert jnp.allclose(out2, ref2, atol=1e-3, rtol=1e-4)

    print("KERNEL_OK")
</pallas_src>

<mosaic_0001>
module attributes {stable_mosaic.version = 11 : i64} {
  func.func @kernel(%arg0: i32, %arg1: memref<16x128xf32, #tpu.memory_space<vmem>>, %arg2: memref<128x128xf32, #tpu.memory_space<vmem>>, %arg3: memref<1x128xf32, #tpu.memory_space<vmem>>, %arg4: memref<16x128xf32, #tpu.memory_space<vmem>>) attributes {dimension_semantics = [#tpu.dimension_semantics<parallel>], iteration_bounds = array<i64: 1>, scalar_prefetch = 0 : i64, scratch_operands = 0 : i64, tpu.core_type = #tpu.core_type<tc>, window_params = [{transform_indices = @transform_0, window_bounds = array<i64: 16, 128>}, {pipeline_mode = #tpu.pipeline_mode<synchronous>, transform_indices = @transform_1, window_bounds = array<i64: 128, 128>}, {pipeline_mode = #tpu.pipeline_mode<synchronous>, transform_indices = @transform_2, window_bounds = array<i64: 1, 128>}, {transform_indices = @transform_3, window_bounds = array<i64: 16, 128>}]} {
    %c0 = arith.constant 0 : index
    %c0_0 = arith.constant 0 : index
    %0 = vector.load %arg1[%c0, %c0_0] : memref<16x128xf32, #tpu.memory_space<vmem>>, vector<16x128xf32>
    %c0_1 = arith.constant 0 : index
    %c0_2 = arith.constant 0 : index
    %1 = vector.load %arg2[%c0_1, %c0_2] : memref<128x128xf32, #tpu.memory_space<vmem>>, vector<128x128xf32>
    %cst = arith.constant dense<0.000000e+00> : vector<16x128xf32>
    %2 = tpu.matmul %0, %1, %cst {dimension_numbers = #tpu.dot_dimension_numbers<[1], [0], [0], [1], [0, 0, 1, 1], [], []>} : vector<16x128xf32>, vector<128x128xf32>, vector<16x128xf32> -> vector<16x128xf32>
    %c0_3 = arith.constant 0 : index
    %c0_4 = arith.constant 0 : index
    %3 = vector.load %arg3[%c0_3, %c0_4] : memref<1x128xf32, #tpu.memory_space<vmem>>, vector<1x128xf32>
    %4 = vector.broadcast %3 : vector<1x128xf32> to vector<16x128xf32>
    %5 = arith.addf %2, %4 : vector<16x128xf32>
    %c0_5 = arith.constant 0 : index
    %c0_6 = arith.constant 0 : index
    %6 = vector.load %arg4[%c0_5, %c0_6] : memref<16x128xf32, #tpu.memory_space<vmem>>, vector<16x128xf32>
    tpu.vector_store %arg4[%c0_5, %c0_6], %5 {strides = array<i32>} : memref<16x128xf32, #tpu.memory_space<vmem>>, vector<16x128xf32>,
    return
  }
  func.func @transform_0(%arg0: i32) -> (i32, i32) {
    %c0_i32 = arith.constant 0 : i32
    %c0_i32_0 = arith.constant 0 : i32
    return %arg0, %c0_i32 : i32, i32
  }
  func.func @transform_1(%arg0: i32) -> (i32, i32) {
    %c0_i32 = arith.constant 0 : i32
    %c0_i32_0 = arith.constant 0 : i32
    %c0_i32_1 = arith.constant 0 : i32
    return %c0_i32, %c0_i32_0 : i32, i32
  }
  func.func @transform_2(%arg0: i32) -> (i32, i32) {
    %c0_i32 = arith.constant 0 : i32
    %c0_i32_0 = arith.constant 0 : i32
    %c0_i32_1 = arith.constant 0 : i32
    return %c0_i32, %c0_i32_0 : i32, i32
  }
  func.func @transform_3(%arg0: i32) -> (i32, i32) {
    %c0_i32 = arith.constant 0 : i32
    %c0_i32_0 = arith.constant 0 : i32
    return %arg0, %c0_i32 : i32, i32
  }
}

</mosaic_0001>

<bundles_post_ra>
// kernel: tpu_custom_call.1
= control target key start
LH: loop header
LB: loop body
LE: loop exit
PB: predicated region body
PF: predicated region fallthrough
CT: control target
= control target key end

     0   :  { %8 = vsyncpa [#allocation3], 0  ;;  %s399_s0 = inlined_call_operand.hbm [shape: f32[16,128], index: 0, kind: input, shape index: {}]   ;;  %s400_s1 = inlined_call_operand.hbm [shape: f32[128,128], index: 1, kind: input, shape index: {}]   ;;  %s401_s2 = inlined_call_operand.vmem [shape: f32[1,128], index: 2, kind: input, shape index: {}]   ;;  %s402_s3 = inlined_call_operand.hbm [shape: f32[16,128], index: 3, kind: output, shape index: {}]  }
   0x1   :  { %9 = vsyncpa [#allocation6], 0 }
   0x2   :  { %10 = vsyncpa [#allocation4], 0  ;;  %s326_s12 = smov [#allocation2]   ;;  %s254_s16 = scalar_lea.hbm %s399_s0, 256 }
   0x3   :  { %s16_s13 = sshll.u32 %s326_s12, 4  ;;  %p255_p0 = scmp.ne.s32.totalorder %s399_s0, %s254_s16  ;;  %s17_s13 = int_to_ptr.vmem [resolvable:$true] %s16_s13 }
   0x4   :  { %p258_p1 = scmp.lt.u32.totalorder %s254_s16, %s399_s0 }
   0x6   :  { %p260_p2 = pnand %p258_p1, %p255_p0 }
   0x8   :  { %263 = shalt.err (!%p260_p2)
}
   0x9   :  { %s264_s21 = scalar_lea.vmem %s17_s13, 256  ;;  %p269_p4 = scmp.lt.s32.totalorder %s17_s13, %s17_s13 }
   0xa   :  { %p265_p3 = scmp.ne.s32.totalorder %s17_s13, %s264_s21  ;;  %p270_p5 = scmp.lt.s32.totalorder %s264_s21, %s264_s21 }
   0xc   :  { %p271_p6 = por %p270_p5, %p269_p4 }
   0xe   :  { %p272_p7 = pnand %p271_p6, %p265_p3 }
  0x10   :  { %275 = shalt.err (!%p272_p7)
}
  0x11   :  { %s327_s22 = smov 128   ;;  %s328_s23 = smov 8  }
  0x12   :  { %22 = dma.hbm_to_vmem [thread:$0]  %s399_s0, 256, %s17_s13, [#allocation3], %s327_s22, %s327_s22, %s328_s23  }
  0x13   :  { %s329_s26 = smov [#allocation5]   ;;  %s276_s30 = scalar_lea.hbm %s400_s1, 2048 }
  0x14   :  { %s28_s27 = sshll.u32 %s329_s26, 4  ;;  %p277_p8 = scmp.ne.s32.totalorder %s400_s1, %s276_s30  ;;  %s29_s27 = int_to_ptr.vmem [resolvable:$true] %s28_s27 }
  0x15   :  { %p280_p9 = scmp.lt.u32.totalorder %s276_s30, %s400_s1 }
  0x17   :  { %p282_p10 = pnand %p280_p9, %p277_p8 }
  0x19   :  { %285 = shalt.err (!%p282_p10)
}
  0x1a   :  { %s286_s8 = scalar_lea.vmem %s29_s27, 2048  ;;  %p291_p12 = scmp.lt.s32.totalorder %s29_s27, %s29_s27 }
  0x1b   :  { %p287_p11 = scmp.ne.s32.totalorder %s29_s27, %s286_s8  ;;  %p292_p13 = scmp.lt.s32.totalorder %s286_s8, %s286_s8 }
  0x1d   :  { %p293_p0 = por %p292_p13, %p291_p12 }
  0x1f   :  { %p294_p1 = pnand %p293_p0, %p287_p11 }
  0x21   :  { %297 = shalt.err (!%p294_p1)
}
  0x22   :  { %34 = dma.hbm_to_vmem [thread:$0]  %s400_s1, 2048, %s29_s27, [#allocation6], %s327_s22, %s327_s22, %s328_s23  }
  0x23   :  { %320 = dma.done.wait [#allocation3], 256  }
  0x24   :  { %321 = vsyncadd [#allocation3], 4294967040 }
  0x25   :  { %322 = dma.done.wait [#allocation6], 2048  }
  0x26   :  { %323 = vsyncadd [#allocation6], 4294965248  ;;  %v45_v0 = vld [vmem:[#allocation5] sm:$0xff]  ;;  %v46_v1 = vld [vmem:[#allocation5 + $0x8] sm:$0xff]  ;;  %s330_s11 = smov [#allocation7]  }
  0x27   :  { %v47_v2 = vld [vmem:[#allocation5 + $0x10] sm:$0xff]  ;;  %v217_v3 = vpack.c.bf16 %v46_v1, %v45_v0  ;;  %v48_v4 = vld [vmem:[#allocation5 + $0x18] sm:$0xff]  ;;  %v49_v6 = vld [vmem:[#allocation5 + $0x20] sm:$0xff]  ;;  %s150_s12 = sshll.u32 %s330_s11, 4  ;;  %s151_s12 = int_to_ptr.vmem [resolvable:$true] %s150_s12 }
  0x28   :  { %v221_v5 = vpack.c.bf16 %v48_v4, %v47_v2  ;;  %v50_v7 = vld [vmem:[#allocation5 + $0x28] sm:$0xff]  ;;  %v43_v9 = vld [vmem:[#allocation2] sm:$0xff]  ;;  %v52_v11 = vld [vmem:[#allocation5 + $0x38] sm:$0xff]  ;;  %s298_s13 = scalar_lea.vmem %s151_s12, 256  ;;  %p303_p3 = scmp.lt.s32.totalorder %s151_s12, %s151_s12 }
  0x29   :  { %218 = vmatprep.subr.bf16.mxu0 %v217_v3  ;;  %v225_v8 = vpack.c.bf16 %v50_v7, %v49_v6  ;;  %v51_v10 = vld [vmem:[#allocation5 + $0x30] sm:$0xff]  ;;  %214 = vmatprep.mubr.f32.mxu0 %v43_v9  ;;  %v53_v13 = vld [vmem:[#allocation5 + $0x40] sm:$0xff]  ;;  %v54_v14 = vld [vmem:[#allocation5 + $0x48] sm:$0xff]  ;;  %p299_p2 = scmp.ne.s32.totalorder %s151_s12, %s298_s13  ;;  %p304_p4 = scmp.lt.s32.totalorder %s298_s13, %s298_s13 }
  0x2a   :  { %220 = vmatpush3.bf16.msra.mxu0 %v217_v3  ;;  %v229_v12 = vpack.c.bf16 %v52_v11, %v51_v10  ;;  %v233_v15 = vpack.c.bf16 %v54_v14, %v53_v13  ;;  %v55_v16 = vld [vmem:[#allocation5 + $0x50] sm:$0xff]  ;;  %v56_v17 = vld [vmem:[#allocation5 + $0x58] sm:$0xff]  ;;  %v57_v19 = vld [vmem:[#allocation5 + $0x60] sm:$0xff] }
  0x2b   :  { %222 = vmatprep.subr.bf16.mxu0 %v221_v5  ;;  %v237_v18 = vpack.c.bf16 %v56_v17, %v55_v16  ;;  %v58_v20 = vld [vmem:[#allocation5 + $0x68] sm:$0xff]  ;;  %v59_v22 = vld [vmem:[#allocation5 + $0x70] sm:$0xff]  ;;  %v60_v23 = vld [vmem:[#allocation5 + $0x78] sm:$0xff]  ;;  %p305_p5 = por %p304_p4, %p303_p3 }
  0x2c   :  { %v241_v21 = vpack.c.bf16 %v58_v20, %v57_v19  ;;  %v245_v24 = vpack.c.bf16 %v60_v23, %v59_v22  ;;  %v44_v25 = vld [vmem:[#allocation2 + $0x8] sm:$0xff]  ;;  %v163_v26 = vld [vmem:[%s401_s2] ss:$0 sm:$0xff] }
  0x2d   :  { %p306_p6 = pnand %p305_p5, %p299_p2 }
  0x2e   :  { %224 = vmatpush3.bf16.msra.mxu0 %v221_v5 }
  0x2f   :  { %226 = vmatprep.subr.bf16.mxu0 %v225_v8 }
  0x32   :  { %228 = vmatpush3.bf16.msra.mxu0 %v225_v8 }
  0x33   :  { %230 = vmatprep.subr.bf16.mxu0 %v229_v12 }
  0x36   :  { %232 = vmatpush3.bf16.msra.mxu0 %v229_v12 }
  0x37   :  { %234 = vmatprep.subr.bf16.mxu0 %v233_v15 }
  0x3a   :  { %236 = vmatpush3.bf16.msra.mxu0 %v233_v15 }
  0x3b   :  { %238 = vmatprep.subr.bf16.mxu0 %v237_v18 }
  0x3e   :  { %240 = vmatpush3.bf16.msra.mxu0 %v237_v18 }
  0x3f   :  { %242 = vmatprep.subr.bf16.mxu0 %v241_v21 }
  0x42   :  { %244 = vmatpush3.bf16.msra.mxu0 %v241_v21 }
  0x43   :  { %246 = vmatprep.subr.bf16.mxu0 %v245_v24 }
  0x46   :  { %248 = vmatpush3.bf16.msra.mxu0 %v245_v24 }
  0x49   :  { %215 = vmatmul.mubr.f32.vlgmr.msra.gmra.mrb[0].mxu0 %v44_v25 }
 0x11c   :  { %v216_v27 = vpop.f32.mrb[0].mxu0 }
 0x11d   :  { %v140_v28 = vadd.f32 %v216_v27, %v163_v26  ;;  %v134_v29 = vpop.f32.mrb[1].mxu0 }
 0x11e   :  { %v135_v30 = vadd.f32 %v163_v26, %v134_v29 }
 0x11f   :  { %144 = vst [vmem:[#allocation7 + $0x8] sm:$0xff] %v140_v28 }
 0x120   :  { %143 = vst [vmem:[#allocation7] sm:$0xff] %v135_v30 }
 0x121   :  { %309 = shalt.err (!%p306_p6)
}
 0x122   :  { %s310_s2 = scalar_lea.hbm %s402_s3, 256 }
 0x123   :  { %p311_p7 = scmp.ne.s32.totalorder %s402_s3, %s310_s2  ;;  %p314_p8 = scmp.lt.u32.totalorder %s310_s2, %s402_s3 }
 0x125   :  { %p316_p9 = pnand %p314_p8, %p311_p7 }
 0x127   :  { %319 = shalt.err (!%p316_p9)
}
 0x128   :  { %156 = dma.vmem_to_hbm [thread:$0]  %s151_s12, 256, %s402_s3, [#allocation4], %s327_s22, %s327_s22, %s328_s23  }
 0x129   :  { %324 = dma.done.wait [#allocation4], 256  }
 0x12a   :  { %325 = vsyncadd [#allocation4], 4294967040 }
 0x12b   :  { %160 = vsyncpa [#allocation3], 1 }
 0x12c   :  { %161 = vsyncpa [#allocation6], 1 }
 0x12d   :  { %162 = vsyncpa [#allocation4], 1 }

</bundles_post_ra>
